<compile_context>
chip_gen: v5e
topology: v5e:2x2
jax: 0.10.0
libtpu: 0.0.40
codegen_flags: <defaults>
</compile_context>

<pallas_src>
import functools

import jax
import jax.numpy as jnp
from jax.experimental import pallas as pl
from jax.experimental.pallas import tpu as pltpu


# ------------------------------- kernel ---------------------------------------


def fused_linear_lora_kernel(x_ref, ts_ref, wt_ref, bst_ref, b_ref, o_ref):
    """One (batch, seq-tile, out-tile) block of
         out = x @ W.T + b + T_scaled @ B_stacked
       where T_scaled = (x @ A_stacked) * (routing*scaling) was hoisted out of
       the per-output-tile loop (computed once per token, not once per N tile)."""
    x = x_ref[...]                                                       # (St, D_in)
    acc = jnp.dot(x, wt_ref[...], preferred_element_type=jnp.float32)   # (St, Nt)
    acc = acc + jnp.dot(ts_ref[...], bst_ref[...],
                        preferred_element_type=jnp.float32)             # (St, Nt)
    acc = acc + b_ref[...]                                               # (1, Nt)
    o_ref[...] = acc.astype(o_ref.dtype)


# ----------------------- one-time parameter preparation ------------------------


def prepare_params(params, *, num_experts, lora_rank, compute_dtype):
    """Pre-transpose to (K, N) layout and cast once, outside the per-call path."""
    W, b, Wr, br, A, Bm = (params[k] for k in ("W", "b", "Wr", "br", "A", "Bm"))
    D_out, D_in = W.shape
    E, r = num_experts, lora_rank
    return {
        "Wt":  jnp.asarray(W.T, dtype=compute_dtype),                        # (D_in, D_out)
        "b":   jnp.asarray(b.reshape(1, D_out), dtype=jnp.float32),
        "Wrt": jnp.asarray(Wr.T, dtype=jnp.float32),                         # (D_in, E)
        "br":  jnp.asarray(br.reshape(1, E), dtype=jnp.float32),
        # A: (E, r, D_in) -> (D_in, E*r);  Bm: (E, D_out, r) -> (E*r, D_out)
        "At":  jnp.asarray(jnp.transpose(A, (2, 0, 1)).reshape(D_in, E * r),
                           dtype=compute_dtype),
        "Bst": jnp.asarray(jnp.transpose(Bm, (0, 2, 1)).reshape(E * r, D_out),
                           dtype=compute_dtype),
    }


# --------------------------------- wrapper -------------------------------------


def lora_moe_qk_forward(x, prep, *, question_start_index, question_end_index,
                        num_experts, lora_rank, lora_alpha,
                        compute_dtype=jnp.bfloat16, seq_tile=None, n_tile=None,
                        out_dtype=None):
    B, S, D_in = x.shape
    D_out = prep["Wt"].shape[1]
    E, r = num_experts, lora_rank
    Er = E * r
    scaling = lora_alpha / lora_rank
    out_dtype = x.dtype if out_dtype is None else out_dtype

    # --- router: tiny (B, E) matmul + softmax.  Plain XLA — a Pallas call here
    # is pure launch overhead and a serialization point on the critical path.
    xagg = jnp.mean(x[:, question_start_index:question_end_index, :],
                    axis=1).astype(jnp.float32)                           # (B, D_in)
    routing = jax.nn.softmax(xagg @ prep["Wrt"] + prep["br"], axis=-1)    # (B, E)

    # --- LoRA down-projection hoisted out of the main kernel: once per token,
    # not once per output-N tile.  bf16 matmul, f32 accumulation, scaled in f32.
    xc = x.astype(compute_dtype)
    rexp = jnp.repeat(routing * scaling, r, axis=1)                       # (B, E*r) f32
    t = jnp.einsum("bsd,dn->bsn", xc, prep["At"],
                   preferred_element_type=jnp.float32)                    # (B, S, E*r)
    t_scaled = (t * rexp[:, None, :]).astype(compute_dtype)

    # --- tile selection, bounded by physical VMEM (v7x: only 64 MiB / core).
    try:
        vmem_cap = int(pltpu.get_tpu_info().vmem_capacity_bytes)
    except Exception:                                                     # pragma: no cover
        vmem_cap = 64 * 2**20                                             # conservative (v7x)

    csize = jnp.dtype(compute_dtype).itemsize
    osize = jnp.dtype(out_dtype).itemsize
    if seq_tile is None:
        seq_tile = min(S, 256)
    if n_tile is None:
        n_tile = min(D_out, 1024 if vmem_cap >= (96 << 20) else 512)

    def block_bytes(st, nt):
        # double-buffered inputs + double-buffered output tile + bias
        return 2 * (st * D_in * csize + st * Er * csize + D_in * nt * csize
                    + Er * nt * csize + nt * 4 + st * nt * osize)

    budget = (vmem_cap * 7) // 8
    while (block_bytes(seq_tile, n_tile) + (2 << 20) > budget
           and n_tile > 256 and D_out % (n_tile // 2) == 0):
        n_tile //= 2

    assert S % seq_tile == 0 and D_out % n_tile == 0, (
        "TODO(synk): ragged seq / output shapes need a padded fallback")

    vmem_limit = int(min(budget,
                         max(32 << 20, block_bytes(seq_tile, n_tile) + (2 << 20))))

    flops = 2 * B * S * D_in * D_out + 2 * B * S * Er * D_out
    bytes_accessed = (B * S * D_in * csize + B * S * Er * csize
                      + D_in * D_out * csize + Er * D_out * csize
                      + D_out * 4 + B * S * D_out * osize)

    # N innermost + "arbitrary": x / T_scaled block indices are constant over the
    # N loop, so Pallas keeps them resident; only Wt / Bst / bias stream per step.
    # On v7x the core-sharded parallel axis is then B or S, never N.
    grid = (B, S // seq_tile, D_out // n_tile)
    out = pl.pallas_call(
        fused_linear_lora_kernel,
        out_shape=jax.ShapeDtypeStruct((B, S, D_out), out_dtype),
        grid=grid,
        in_specs=[
            pl.BlockSpec((None, seq_tile, D_in), lambda b, s, n: (b, s, 0)),   # x tile
            pl.BlockSpec((None, seq_tile, Er),   lambda b, s, n: (b, s, 0)),   # T_scaled tile
            pl.BlockSpec((D_in, n_tile),         lambda b, s, n: (0, n)),      # W.T tile (K,N)
            pl.BlockSpec((Er, n_tile),           lambda b, s, n: (0, n)),      # B stacked (E*r,N)
            pl.BlockSpec((1, n_tile),            lambda b, s, n: (0, n)),      # bias tile
        ],
        out_specs=pl.BlockSpec((None, seq_tile, n_tile), lambda b, s, n: (b, s, n)),
        compiler_params=pltpu.CompilerParams(
            dimension_semantics=("parallel", "parallel", "arbitrary"),
            vmem_limit_bytes=vmem_limit),
        cost_estimate=pl.CostEstimate(flops=int(flops), transcendentals=0,
                                      bytes_accessed=int(bytes_accessed)),
    )(xc, t_scaled, prep["Wt"], prep["Bst"], prep["b"])

    return out, (routing, None)


# -------------------------------- reference ------------------------------------


def reference_forward(x, params, *, question_start_index, question_end_index,
                      num_experts, lora_rank, lora_alpha):
    W, b, Wr, br, A, Bm = (params[k] for k in ("W", "b", "Wr", "br", "A", "Bm"))
    scaling = lora_alpha / lora_rank
    xq = x[:, question_start_index:question_end_index, :]
    xagg = xq.mean(axis=1)
    routing = jax.nn.softmax(xagg @ Wr.T + br, axis=-1)
    orig = x @ W.T + b
    t = jnp.einsum("bsd,erd->bser", x, A)             # (B, S, E, r)
    le = jnp.einsum("bser,edr->bsed", t, Bm)          # (B, S, E, D)
    lora = (le * scaling * routing[:, None, :, None]).sum(axis=2)
    return orig + lora, routing


# ----------------------------------- main --------------------------------------


if __name__ == "__main__":
    B, S, D = 2, 16, 64          # batch, sequence, d_model (fan_in == fan_out)
    E, RANK, ALPHA = 4, 4, 8     # num_experts, lora_rank, lora_alpha
    Q_START, Q_END = 4, -1       # question-token slice (module default end is -1)

    key = jax.random.PRNGKey(0)
    kx, kW, kb, kWr, kbr, kA, kB = jax.random.split(key, 7)

    x = jax.random.normal(kx, (B, S, D), dtype=jnp.float32)

    bound_a = 1.0 / jnp.sqrt(jnp.float32(D))  # kaiming_uniform(a=sqrt(5)) bound for lora_A
    params = {
        "W":  jax.random.normal(kW, (D, D), dtype=jnp.float32) * 0.02,   # original_module.weight
        "b":  jax.random.normal(kb, (D,), dtype=jnp.float32) * 0.02,     # original_module.bias
        "Wr": jax.random.normal(kWr, (E, D), dtype=jnp.float32) * 0.02,  # router.weight
        "br": jax.random.normal(kbr, (E,), dtype=jnp.float32) * 0.02,    # router.bias
        "A":  jax.random.uniform(kA, (E, RANK, D), dtype=jnp.float32,
                                 minval=-bound_a, maxval=bound_a),       # stacked lora_A
        # lora_B is zero-initialized in __init__; random here so the MoE path
        # does non-trivial work in this synthetic test.
        "Bm": jax.random.normal(kB, (E, D, RANK), dtype=jnp.float32) * 0.02,
    }

    compute_dtype = jnp.bfloat16   # bf16 matmuls, f32 accumulation (v6e/v7x MXU rate)
    prep = prepare_params(params, num_experts=E, lora_rank=RANK,
                          compute_dtype=compute_dtype)

    fwd = jax.jit(functools.partial(
        lora_moe_qk_forward,
        question_start_index=Q_START, question_end_index=Q_END,
        num_experts=E, lora_rank=RANK, lora_alpha=ALPHA,
        compute_dtype=compute_dtype))

    out, (routing, _) = fwd(x, prep)
    out = jax.block_until_ready(out)
    routing = jax.block_until_ready(routing)

    ref_out, ref_routing = reference_forward(
        x, params,
        question_start_index=Q_START, question_end_index=Q_END,
        num_experts=E, lora_rank=RANK, lora_alpha=ALPHA)

    assert jnp.allclose(routing, ref_routing, atol=1e-4, rtol=1e-4), "routing mismatch"
    tol = 2e-2 if compute_dtype == jnp.bfloat16 else 1e-4
    assert jnp.allclose(out, ref_out, atol=tol, rtol=tol), "output mismatch"

    print("KERNEL_OK")
</pallas_src>

<mosaic_0001>
module attributes {stable_mosaic.version = 11 : i64} {
  func.func @fused_linear_lora_kernel(%arg0: i32, %arg1: i32, %arg2: i32, %arg3: memref<1x16x64xbf16, #tpu.memory_space<vmem>>, %arg4: memref<1x16x16xbf16, #tpu.memory_space<vmem>>, %arg5: memref<64x64xbf16, #tpu.memory_space<vmem>>, %arg6: memref<16x64xbf16, #tpu.memory_space<vmem>>, %arg7: memref<1x64xf32, #tpu.memory_space<vmem>>, %arg8: memref<1x16x64xf32, #tpu.memory_space<vmem>>) attributes {dimension_semantics = [#tpu.dimension_semantics<parallel>, #tpu.dimension_semantics<parallel>, #tpu.dimension_semantics<arbitrary>], iteration_bounds = array<i64: 2, 1, 1>, scalar_prefetch = 0 : i64, scratch_operands = 0 : i64, tpu.core_type = #tpu.core_type<tc>, window_params = [{transform_indices = @transform_0, window_bounds = array<i64: 1, 16, 64>}, {transform_indices = @transform_1, window_bounds = array<i64: 1, 16, 16>}, {transform_indices = @transform_2, window_bounds = array<i64: 64, 64>}, {transform_indices = @transform_3, window_bounds = array<i64: 16, 64>}, {transform_indices = @transform_4, window_bounds = array<i64: 1, 64>}, {transform_indices = @transform_5, window_bounds = array<i64: 1, 16, 64>}]} {
    %c0 = arith.constant 0 : index
    %c0_0 = arith.constant 0 : index
    %c0_1 = arith.constant 0 : index
    %0 = vector.load %arg3[%c0, %c0_0, %c0_1] : memref<1x16x64xbf16, #tpu.memory_space<vmem>>, vector<1x16x64xbf16>
    %1 = vector.shape_cast %0 : vector<1x16x64xbf16> to vector<16x64xbf16>
    %c0_2 = arith.constant 0 : index
    %c0_3 = arith.constant 0 : index
    %2 = vector.load %arg5[%c0_2, %c0_3] : memref<64x64xbf16, #tpu.memory_space<vmem>>, vector<64x64xbf16>
    %cst = arith.constant dense<0.000000e+00> : vector<16x64xf32>
    %3 = tpu.matmul %1, %2, %cst {dimension_numbers = #tpu.dot_dimension_numbers<[1], [0], [0], [1], [0, 0, 1, 1], [], []>} : vector<16x64xbf16>, vector<64x64xbf16>, vector<16x64xf32> -> vector<16x64xf32>
    %c0_4 = arith.constant 0 : index
    %c0_5 = arith.constant 0 : index
    %c0_6 = arith.constant 0 : index
    %4 = vector.load %arg4[%c0_4, %c0_5, %c0_6] : memref<1x16x16xbf16, #tpu.memory_space<vmem>>, vector<1x16x16xbf16>
    %5 = vector.shape_cast %4 : vector<1x16x16xbf16> to vector<16x16xbf16>
    %c0_7 = arith.constant 0 : index
    %c0_8 = arith.constant 0 : index
    %6 = vector.load %arg6[%c0_7, %c0_8] : memref<16x64xbf16, #tpu.memory_space<vmem>>, vector<16x64xbf16>
    %cst_9 = arith.constant dense<0.000000e+00> : vector<16x64xf32>
    %7 = tpu.matmul %5, %6, %cst_9 {dimension_numbers = #tpu.dot_dimension_numbers<[1], [0], [0], [1], [0, 0, 1, 1], [], []>} : vector<16x16xbf16>, vector<16x64xbf16>, vector<16x64xf32> -> vector<16x64xf32>
    %8 = arith.addf %3, %7 : vector<16x64xf32>
    %c0_10 = arith.constant 0 : index
    %c0_11 = arith.constant 0 : index
    %9 = vector.load %arg7[%c0_10, %c0_11] : memref<1x64xf32, #tpu.memory_space<vmem>>, vector<1x64xf32>
    %10 = vector.broadcast %9 : vector<1x64xf32> to vector<16x64xf32>
    %11 = arith.addf %8, %10 : vector<16x64xf32>
    %c0_12 = arith.constant 0 : index
    %c0_13 = arith.constant 0 : index
    %c0_14 = arith.constant 0 : index
    %12 = vector.load %arg8[%c0_12, %c0_13, %c0_14] : memref<1x16x64xf32, #tpu.memory_space<vmem>>, vector<1x16x64xf32>
    %13 = vector.shape_cast %12 : vector<1x16x64xf32> to vector<16x64xf32>
    %14 = vector.shape_cast %11 : vector<16x64xf32> to vector<1x16x64xf32>
    tpu.vector_store %arg8[%c0_12, %c0_13, %c0_14], %14 {strides = array<i32>} : memref<1x16x64xf32, #tpu.memory_space<vmem>>, vector<1x16x64xf32>,
    return
  }
  func.func @transform_0(%arg0: i32, %arg1: i32, %arg2: i32) -> (i32, i32, i32) {
    %c0_i32 = arith.constant 0 : i32
    %c0_i32_0 = arith.constant 0 : i32
    return %arg0, %arg1, %c0_i32 : i32, i32, i32
  }
  func.func @transform_1(%arg0: i32, %arg1: i32, %arg2: i32) -> (i32, i32, i32) {
    %c0_i32 = arith.constant 0 : i32
    %c0_i32_0 = arith.constant 0 : i32
    return %arg0, %arg1, %c0_i32 : i32, i32, i32
  }
  func.func @transform_2(%arg0: i32, %arg1: i32, %arg2: i32) -> (i32, i32) {
    %c0_i32 = arith.constant 0 : i32
    %c0_i32_0 = arith.constant 0 : i32
    return %c0_i32, %arg2 : i32, i32
  }
  func.func @transform_3(%arg0: i32, %arg1: i32, %arg2: i32) -> (i32, i32) {
    %c0_i32 = arith.constant 0 : i32
    %c0_i32_0 = arith.constant 0 : i32
    return %c0_i32, %arg2 : i32, i32
  }
  func.func @transform_4(%arg0: i32, %arg1: i32, %arg2: i32) -> (i32, i32) {
    %c0_i32 = arith.constant 0 : i32
    %c0_i32_0 = arith.constant 0 : i32
    return %c0_i32, %arg2 : i32, i32
  }
  func.func @transform_5(%arg0: i32, %arg1: i32, %arg2: i32) -> (i32, i32, i32) {
    %c0_i32 = arith.constant 0 : i32
    return %arg0, %arg1, %arg2 : i32, i32, i32
  }
}

</mosaic_0001>

<bundles_post_ra>
// kernel: mul.7
= control target key start
LH: loop header
LB: loop body
LE: loop exit
PB: predicated region body
PF: predicated region fallthrough
CT: control target
= control target key end

     0   :  { %s29_s10 = smov 3  ;;  %s45_s11 = smov 12   ;;  %vm12_vm0 = vcmask 31744   ;;  %vm19_vm1 = vcmask 130144   ;;  %vm26_vm2 = vcmask 97344   ;;  %vm33_vm3 = vcmask 64544   ;;  %s67_s0 = inlined_call_operand.vmem [shape: f32[2,4,4], index: 0, kind: input, shape index: {}]   ;;  %s68_s1 = inlined_call_operand.vmem [shape: f32[2,16], index: 1, kind: output, shape index: {}]  }
   0x1   :  { %v41_v0 = vld [vmem:[%s67_s0 + $0x4] sm:$0xf]  ;;  %v8_v1 = vld [vmem:[%s67_s0] sm:$0xf]  ;;  %s15_s0 = smov 3  ;;  %s46_s12 = smov 4  }
   0x2   :  { %7 = vst [vmem:[#allocation1 + $0x8] sm:$0xf] %v41_v0  ;;  %s22_s13 = smov 3  ;;  %s47_s14 = smov 8  }
   0x3   :  { %9 = vst [vmem:[#allocation1] sm:$0xf] %v8_v1  ;;  %s10_s15 = smov 3 }
   0xa   :  { %v16_v2 = vld [vmem:[#allocation1 + $0x3] ss:$8 sm:%s15_s0]   ;;  %v30_v3 = vld [vmem:[#allocation1 + $0x1] ss:$8 sm:%s29_s10]   ;;  %v23_v4 = vld [vmem:[#allocation1 + $0x2] ss:$8 sm:%s22_s13]  }
   0xb   :  { %17 = vrot.lane.b32.xlu0 %v16_v2, %s45_s11  ;;  %31 = vrot.lane.b32.xlu1 %v30_v3, %s46_s12  ;;  %v11_v5 = vld [vmem:[#allocation1] ss:$8 sm:%s10_s15]  }
   0xc   :  { %13 = vst.msk [vmem:[#allocation0] sm:$0x3] %vm12_vm0, %v11_v5  }
  0x13   :  { %24 = vrot.lane.b32.xlu0 %v23_v4, %s47_s14 }
  0x7d   :  { %v18_v6 = vpop.permute.xlu0 %17   ;;  %v32_v7 = vpop.permute.xlu1 %31  }
  0x7e   :  { %20 = vst.msk [vmem:[#allocation0] sm:$0x3] %vm19_vm1, %v18_v6  }
  0x85   :  { %v25_v8 = vpop.permute.xlu0 %24  }
  0x86   :  { %27 = vst.msk [vmem:[#allocation0] sm:$0x3] %vm26_vm2, %v25_v8  }
  0x87   :  { %34 = vst.msk [vmem:[#allocation0] sm:$0x3] %vm33_vm3, %v32_v7  }
  0x8e   :  { %v37_v9 = vld [vmem:[#allocation0] sm:$0x3] }
  0x8f   :  { %40 = vst [vmem:[%s68_s1] sm:$0x3] %v37_v9 }

// kernel: lora_moe_qk_forward.1
= control target key start
LH: loop header
LB: loop body
LE: loop exit
PB: predicated region body
PF: predicated region fallthrough
CT: control target
= control target key end

     0   :  { %10 = vsyncpa [#allocation3], 0  ;;  %s957_s0 = inlined_call_operand.vmem [shape: bf16[2,16,64], index: 0, kind: input, shape index: {}]   ;;  %s958_s1 = inlined_call_operand.vmem [shape: bf16[2,16,16], index: 1, kind: input, shape index: {}]   ;;  %s959_s2 = inlined_call_operand.vmem [shape: bf16[64,64], index: 2, kind: input, shape index: {}]   ;;  %s960_s3 = inlined_call_operand.vmem [shape: bf16[16,64], index: 3, kind: input, shape index: {}]   ;;  %s961_s4 = inlined_call_operand.vmem [shape: f32[1,64], index: 4, kind: input, shape index: {}]   ;;  %s962_s5 = inlined_call_operand.hbm [shape: f32[2,16,64], index: 5, kind: output, shape index: {}]  }
   0x1   :  { %12 = vsyncpa [#allocation3 + $0x1], 0  ;;  %s836_s18 = smov 0   ;;  %s838_s19 = smov 0  }
   0x2   :  { %s840_s20 = smov 0   ;;  %s842_s21 = smov 0  }
   0x3   :  { %s844_s22 = smov 0   ;;  %s846_s23 = smov 0  }
   0x4 LB: > { %s608_s24 = sadd.s32 4294967295, %s802_s23   ;;  %s609_s25 = sadd.s32 4294967294, %s802_s23   ;;  %s802_s23 = sphi %s846_s23, %s18_s23   ;;  %s798_s22 = sphi %s844_s22, %s969_s22   ;;  %s794_s21 = sphi %s842_s21, %s968_s21   ;;  %s790_s20 = sphi %s840_s20, %s967_s20   ;;  %s786_s19 = sphi %s838_s19, %s966_s19   ;;  %s782_s18 = sphi %s836_s18, %s965_s18  }
   0x5   : > { %s37_s26 = sadd.s32 1, %s798_s22  ;;  %s182_s27 = sadd.s32 1, %s790_s20 }
   0x6   : > { %p39_p0 = scmp.ge.s32.totalorder %s37_s26, 2  ;;  %p192_p1 = scmp.ne.s32.totalorder %s790_s20, %s786_s19 }
   0x7   : > { %p193_p2 = scmp.eq.s32.totalorder %s608_s24, 1  ;;  %p198_p3 = scmp.ne.s32.totalorder %s786_s19, %s782_s18 }
   0x8   : > { %s971_s26 = smov (%p39_p0, %s37_s26), 0  ;;  %p199_p5 = scmp.eq.s32.totalorder %s609_s25, 1 }
   0x9   : > { %p876_p4 = por %p193_p2, %p192_p1  ;;  %s175_s29 = ssub.s32 %s798_s22, %s971_s26 }
   0xa   : > { %p615_p6 = scmp.ge.s32.totalorder %s802_s23, 1  ;;  %p180_p7 = scmp.eq.s32.totalorder %s175_s29, 0 }
   0xb   : > { %p883_p8 = por %p199_p5, %p198_p3  ;;  %p263_p9 = scmp.lt.s32.totalorder %s802_s23, 3 }
   0xc   : > { %s889_s6 = scalar_select %p180_p7, %s790_s20, %s182_s27  }
   0xd   : > { %p264_p10 = pnand %p615_p6, %p263_p9 }
   0xe   : > { %p316_p11 = scmp.lt.s32.totalorder (!%p264_p10), %s794_s21, 1  ;;  %s312_s10 = sand.u32 (!%p264_p10), 1, %s786_s19  }
   0xf   : > { %267 = sbr.rel (%p264_p10) target bundleno = 178 (0xb2), region = 40  ;;  %s616_s11 = sshll.u32 (!%p264_p10), %s312_s10, 4 }
  0x10   : > { %s665_s15 = sshll.u32 (!%p264_p10), %s794_s21, 4  ;;  %s314_s24 = scalar_lea.vmem (!%p264_p10), [#allocation2], %s616_s11 }
  0x11   : > { %s462_s25 = sshll.u32 (!%p264_p10), %s314_s24, 4  ;;  %s744_s11 = scalar_lea.hbm (!%p264_p10), %s962_s5, 32  ;;  %s463_s25 = int_to_ptr.vmem [resolvable:$true] %s462_s25 }
  0x14   : > { %v662_v0 = vld [vmem:[%s959_s2 + $0x18] sm:$0xff]  ;;  %v664_v1 = vld [vmem:[%s960_s3] sm:$0xff]  ;;  %v661_v2 = vld [vmem:[%s959_s2 + $0x10] sm:$0xff]  ;;  %s317_s13 = scalar_select %p316_p11, %s794_s21, 1  ;;  %vm373_vm0 = vcmask 130048   ;;  %vm420_vm1 = vcmask 523264  }
  0x15   : > { %428 = vmatpush.bf16.msra.mxu1 %v662_v0  ;;  %384 = vmatpush.bf16.msra.mxu0 %v664_v1  ;;  %v660_v4 = vld [vmem:[%s959_s2 + $0x8] sm:$0xff]  ;;  %v659_v5 = vld [vmem:[%s959_s2] sm:$0xff]  ;;  %s447_s21 = scalar_lea.sflag [#allocation3], %s312_s10 }
  0x16   : > { %s656_s14 = sshll.u32 %s317_s13, 3  ;;  %v723_v8 = vld [vmem:[%s961_s4] ss:$0 sm:$0xff] }
  0x17   : > { %s333_s17 = scalar_lea.vmem %s958_s1, %s656_s14  ;;  %s323_s9 = scalar_lea.vmem %s957_s0, %s656_s14 }
  0x18   : > { %v663_v3 = vld [vmem:[%s333_s17] sm:$0xff]  ;;  %s461_s14 = scalar_lea.hbm %s962_s5, %s665_s15 }
  0x19   : > { %429 = vmatpush.bf16.msra.mxu1 %v661_v2  ;;  %629 = vmatmul.msk.bf16.vlgmr.msra.gmra.mxu0 %vm373_vm0, %v663_v3  ;;  %v658_v6 = vld [vmem:[%s323_s9] sm:$0xff]  ;;  %s464_s27 = sshll.u32 %s461_s14, 4  ;;  %s465_s27 = int_to_ptr.hbm [resolvable:$true] %s464_s27 }
  0x1a   : > { %s738_s29 = sshra.s32 %s465_s27, 4  ;;  %s739_s29 = int_to_ptr.hbm [resolvable:$true] %s738_s29 }
  0x1b   : > { %s740_s7 = scalar_lea.hbm %s739_s29, 16  ;;  %p745_p1 = scmp.lt.s32.totalorder %s739_s29, %s962_s5 }
  0x1c   : > { %p741_p12 = scmp.ne.s32.totalorder %s739_s29, %s740_s7  ;;  %p746_p2 = scmp.lt.s32.totalorder %s744_s11, %s740_s7 }
  0x1d   : > { %430 = vmatpush.bf16.msra.mxu1 %v660_v4 }
  0x1e   : > { %p742_p13 = pnand %p741_p12, %p876_p4  ;;  %p747_p3 = por %p746_p2, %p745_p1 }
  0x20   : > { %p743_p0 = pneg %p742_p13 }
  0x21   : > { %431 = vmatpush.bf16.msra.mxu1 %v659_v5 }
  0x22   : > { %p748_p5 = pnand %p747_p3, %p743_p0 }
  0x24   : > { %650 = vmatmul.msk.bf16.vlgmr.msra.gmra.mxu1 %vm420_vm1, %v658_v6 }
  0x96   : > { %v386_v7 = vpop.f32.mrf.mxu0 }
  0x9e   : > { %v388_v12 = vpop.f32.mrf.mxu0 }
  0xa1   : > { %v433_v9 = vpop.f32.mrf.mxu1 }
  0xa2   : > { %v434_v10 = vadd.f32 %v433_v9, %v386_v7 }
  0xa4   : > { %v442_v11 = vadd.f32 %v723_v8, %v434_v10 }
  0xa6   : > { %444 = vst.msk [vmem:[%s314_s24] sm:$0xff] %vm420_vm1, %v442_v11 }
  0xa9   : > { %v435_v13 = vpop.f32.mrf.mxu1 }
  0xaa   : > { %v436_v14 = vadd.f32 %v435_v13, %v388_v12 }
  0xac   : > { %v443_v15 = vadd.f32 %v723_v8, %v436_v14 }
  0xae   : > { %445 = vst.msk [vmem:[%s314_s24 + $0x8] sm:$0xff] %vm420_vm1, %v443_v15 }
  0xaf   : > { %751 = shalt.err (!%p748_p5)
}
  0xb0   : > { %s804_s10 = smov 128   ;;  %s805_s15 = smov 8  }
  0xb1   : > { %666 = dma.vmem_to_hbm [thread:$0]  (%p876_p4), %s463_s25, 256, %s465_s27, %s447_s21, %s804_s10, %s804_s10, %s805_s15  }
  0xb2 PF: > { %p672_p6 = scmp.ge.s32.totalorder %s802_s23, 2  ;;  %s479_s16 = sand.u32 1, %s782_s18  }
  0xb3   : > { %s480_s17 = scalar_lea.sflag [#allocation3], %s479_s16 }
  0xb4   : > { %p669_p7 = pnand %p672_p6, %p883_p8 }
  0xb6   : > { %p670_p9 = pneg %p669_p7 }
  0xb8   : > { %777 = dma.done.wait (%p670_p9), %s480_s17, 256  }
  0xb9   : > { %779 = vsyncadd (%p670_p9), %s480_s17, 4294967040  ;;  %s18_s23 = sadd.s32 1, %s802_s23   ;;  %s965_s18 = smov %s786_s19 }
  0xba   : > { %p15_p10 = scmp.ge.s32.totalorder %s18_s23, 4   ;;  %s966_s19 = smov %s790_s20 }
  0xbb   : > { %s967_s20 = smov %s889_s6  ;;  %s968_s21 = smov %s798_s22 }
  0xbc   : > { %s969_s22 = smov %s971_s26  ;;  %17 = sbr.rel (!%p15_p10) target bundleno = 4 (0x4), region = 87 }
  0xc1   :  { %486 = vsyncpa [#allocation3], 1 }
  0xc2   :  { %488 = vsyncpa [#allocation3 + $0x1], 1 }

</bundles_post_ra>
